<compile_context>
chip_gen: v7x
topology: tpu7x:2x2x1
jax: 0.10.0
libtpu: 0.0.40
codegen_flags: <defaults>
</compile_context>

<pallas_src>
import numpy as np
import jax
import jax.numpy as jnp
from jax import lax
from jax.experimental import pallas as pl
from jax.experimental.pallas import tpu as pltpu


# ----------------------------------------------------------------------------
# Host-side operand packing (numpy; call ONCE per weight set, not per forward).
# ----------------------------------------------------------------------------
def _folded_band_weights(w_hwio, win):
    """Fold kh + kw taps and the horizontal SAME padding of a 3x3 conv into a
    single matmul weight for the (rows = H, lanes = W*C) activation layout.

    Returns BigW of shape (3*win*cin, win*cout) with
        BigW[(kh*win + wi)*cin + ci, wo*cout + co] = w[kh, wi-wo+1, ci, co]
    (zero when wi-wo+1 is outside [0,3), i.e. horizontal zero padding), so
    with  LHS[h, kh*win*cin + wi*cin + ci] = x_pad[h+kh-1, wi, ci]
    a single LHS @ BigW is exactly the SAME-padded 3x3 convolution.
    """
    kh, kw, cin, cout = w_hwio.shape
    w_np = np.asarray(w_hwio, np.float32)
    big = np.zeros((kh, win * cin, win * cout), np.float32)
    for dy in range(kh):
        for wo in range(win):
            for dx in range(kw):
                wi = wo + dx - 1
                if 0 <= wi < win:          # out-of-range wi == zero padding
                    big[dy, wi * cin:(wi + 1) * cin,
                        wo * cout:(wo + 1) * cout] = w_np[dy, dx]
    return big.reshape(kh * win * cin, win * cout)


def _col_pool_mats(wcols, c):
    """0/1 even/odd column-block selection matrices for the width half of the
    2x2 max pool: max(x @ S_even, x @ S_odd) pools width pairs while keeping
    channels packed on the lane axis.  Shape (2, wcols*c, (wcols//2)*c)."""
    n_out = (wcols // 2) * c
    se = np.zeros((wcols * c, n_out), np.float32)
    so = np.zeros((wcols * c, n_out), np.float32)
    for q in range(wcols // 2):
        for ci in range(c):
            se[(2 * q) * c + ci, q * c + ci] = 1.0
            so[(2 * q + 1) * c + ci, q * c + ci] = 1.0
    return np.stack([se, so])


def pack_vgg_params(w1, b1, w2, b2, H, W):
    """Pack conv weights/biases into MXU-friendly operands.  Run once."""
    C1, C2 = w1.shape[-1], w2.shape[-1]
    W1 = W // 2
    return dict(
        bw1=jnp.asarray(_folded_band_weights(w1, W), jnp.bfloat16),   # (3*W*Cin,  W*C1)
        b1=jnp.tile(jnp.asarray(b1, jnp.float32), W).reshape(1, W * C1),
        bw2=jnp.asarray(_folded_band_weights(w2, W1), jnp.bfloat16),  # (3*W1*C1, W1*C2)
        b2=jnp.tile(jnp.asarray(b2, jnp.float32), W1).reshape(1, W1 * C2),
        s1=jnp.asarray(_col_pool_mats(W, C1), jnp.bfloat16),          # (2, W*C1,  W1*C1)
        s2=jnp.asarray(_col_pool_mats(W1, C2), jnp.float32),          # (2, W1*C2, W2*C2)
    )


# ----------------------------------------------------------------------------
# Fused kernel: [conv3x3+ReLU+pool] x 2 for B_blk images per grid step.
# ----------------------------------------------------------------------------
def _vgg_features_kernel(x_ref, w1_ref, b1_ref, w2_ref, b2_ref, s1_ref, s2_ref,
                         o_ref, l1_ref, y1_ref, l2_ref, y2_ref):
    f32 = jnp.float32
    bf16 = jnp.bfloat16

    B, H, WC0 = x_ref.shape          # images per step, rows, W*Cin lanes
    WC1 = s1_ref.shape[2]            # (W/2)*C1 lanes after layer-1 pool
    WC2 = s2_ref.shape[2]            # (W/4)*C2 lanes after layer-2 pool
    H1, H2 = H // 2, H // 4

    def build_kfold_lhs(l_ref, rows, get_img, wc):
        # LHS[b*rows + h, kh*wc:(kh+1)*wc] = image_b row (h + kh - 1);
        # zero outside [0, rows) (vertical SAME padding).  Only the two halo
        # sub-rows per image are zeroed; they are re-zeroed every step so the
        # kernel stays correct when the "parallel" grid axis is split across
        # TensorCores (v7x) -- everything else is fully overwritten each step.
        zrow = jnp.zeros((1, wc), f32)
        for b in range(B):
            r0 = b * rows
            img = get_img(b)                                        # (rows, wc) f32
            l_ref[r0:r0 + 1, 0:wc] = zrow                           # top halo (kh=0)
            l_ref[r0 + 1:r0 + rows, 0:wc] = img[0:rows - 1]         # kh=0 tap
            l_ref[r0:r0 + rows, wc:2 * wc] = img                    # kh=1 tap
            l_ref[r0:r0 + rows - 1, 2 * wc:3 * wc] = img[1:rows]    # kh=2 tap
            l_ref[r0 + rows - 1:r0 + rows, 2 * wc:3 * wc] = zrow    # bottom halo (kh=2)

    # ---------------- layer 1: conv3x3 + ReLU (one MXU pass, K = 3*W*Cin) ----
    build_kfold_lhs(l1_ref, H, lambda b: x_ref[b], WC0)
    y1 = jnp.dot(l1_ref[...].astype(bf16), w1_ref[...],
                 preferred_element_type=f32)                        # (B*H, W*C1)
    y1_ref[...] = jnp.maximum(y1 + b1_ref[...], 0.0)

    # 2x2 max pool: rows first (VPU, even/odd strided reads), then columns
    # (bf16 0/1 selection matmuls on the MXU with M already halved).
    m1 = B * H
    rp1 = jnp.maximum(y1_ref[pl.ds(0, m1 // 2, stride=2), :],
                      y1_ref[pl.ds(1, m1 // 2, stride=2), :]).astype(bf16)
    p1 = jnp.maximum(
        jnp.dot(rp1, s1_ref[0], preferred_element_type=f32),
        jnp.dot(rp1, s1_ref[1], preferred_element_type=f32))        # (B*H1, W1*C1)

    # ---------------- layer 2: conv3x3 + ReLU (one MXU pass, K = 3*W1*C1) ----
    build_kfold_lhs(l2_ref, H1, lambda b: p1[b * H1:(b + 1) * H1], WC1)
    y2 = jnp.dot(l2_ref[...].astype(bf16), w2_ref[...],
                 preferred_element_type=f32)                        # (B*H1, W1*C2)
    y2_ref[...] = jnp.maximum(y2 + b2_ref[...], 0.0)

    m2 = B * H1
    rp2 = jnp.maximum(y2_ref[pl.ds(0, m2 // 2, stride=2), :],
                      y2_ref[pl.ds(1, m2 // 2, stride=2), :])
    # final column pool kept in f32 so the kernel output matches the f32 reference
    p2 = jnp.maximum(
        jnp.dot(rp2, s2_ref[0], preferred_element_type=f32),
        jnp.dot(rp2, s2_ref[1], preferred_element_type=f32))        # (B*H2, W2*C2)

    # Lane-dense output: one unmasked (B, H2*W2*C2) store (256 lanes/image).
    out_rows = [
        jnp.concatenate([p2[b * H2 + h:b * H2 + h + 1, :] for h in range(H2)], axis=1)
        for b in range(B)
    ]
    o_ref[...] = jnp.concatenate(out_rows, axis=0)


# ----------------------------------------------------------------------------
# Wrapper: VGG.forward == self.features(x)   (cfg = [C1, 'M', C2, 'M'])
# ----------------------------------------------------------------------------
def _pick_batch_block(n, rows_per_image, target_rows=256):
    # Largest divisor of n keeping the matmul M = b*rows_per_image <= 256
    # (v6e/v7x MXU height; fine on v5e too), then prefer >= 2 grid steps so
    # both v7x TensorCores get work.
    divs = [d for d in range(1, n + 1) if n % d == 0]
    cands = [d for d in divs if d * rows_per_image <= target_rows] or [1]
    b = max(cands)
    if n // b < 2:
        two_step = [d for d in cands if n // d >= 2]
        if two_step:
            b = max(two_step)
    return b


@jax.jit
def vgg_features_forward(x_nchw, params):
    N, Cin, H, W = x_nchw.shape
    assert H % 4 == 0 and W % 4 == 0
    W1, W2, H1, H2 = W // 2, W // 4, H // 2, H // 4
    C1 = params["bw1"].shape[1] // W
    C2 = params["bw2"].shape[1] // W1

    b_blk = _pick_batch_block(N, H)
    g = N // b_blk

    # NCHW -> NHWC -> (N, H, W*Cin): W and C folded onto the TPU lane axis.
    x_rows = jnp.transpose(x_nchw, (0, 2, 3, 1)).reshape(N, H, W * Cin)

    out = pl.pallas_call(
        _vgg_features_kernel,
        out_shape=jax.ShapeDtypeStruct((g, b_blk, H2 * W2 * C2), jnp.float32),
        grid=(g,),
        in_specs=[
            pl.BlockSpec((b_blk, H, W * Cin), lambda n: (n, 0, 0)),
            pl.BlockSpec(params["bw1"].shape, lambda n: (0, 0)),
            pl.BlockSpec(params["b1"].shape, lambda n: (0, 0)),
            pl.BlockSpec(params["bw2"].shape, lambda n: (0, 0)),
            pl.BlockSpec(params["b2"].shape, lambda n: (0, 0)),
            pl.BlockSpec(params["s1"].shape, lambda n: (0, 0, 0)),
            pl.BlockSpec(params["s2"].shape, lambda n: (0, 0, 0)),
        ],
        out_specs=pl.BlockSpec((None, b_blk, H2 * W2 * C2), lambda n: (n, 0, 0)),
        scratch_shapes=[
            pltpu.VMEM((b_blk * H, 3 * W * Cin), jnp.float32),    # layer-1 K-folded LHS
            pltpu.VMEM((b_blk * H, W * C1), jnp.float32),         # layer-1 conv output
            pltpu.VMEM((b_blk * H1, 3 * W1 * C1), jnp.float32),   # layer-2 K-folded LHS
            pltpu.VMEM((b_blk * H1, W1 * C2), jnp.float32),       # layer-2 conv output
        ],
        # NOTE: at this toy size VMEM use is <1 MiB; the (W*C)^2 banded weights
        # must be re-budgeted against v7x's 64 MiB VMEM before scaling H/W/C.
        compiler_params=pltpu.CompilerParams(dimension_semantics=("parallel",)),
    )(x_rows, params["bw1"], params["b1"], params["bw2"], params["b2"],
      params["s1"], params["s2"])

    # (grid, b_blk, H2*W2*C2) -> NCHW, matching the PyTorch module's output.
    return jnp.transpose(out.reshape(N, H2, W2, C2), (0, 3, 1, 2))
    # TODO(synk): self.classifier is defined in __init__ but never used by forward().


# ----------------------------------------------------------------------------
# Pure-JAX reference (same precision policy: bf16 conv inputs, f32 accumulation).
# ----------------------------------------------------------------------------
def reference_forward(x_nchw, w1, b1, w2, b2):
    def conv_relu(x, w, b):
        y = lax.conv_general_dilated(
            x.astype(jnp.bfloat16), w.astype(jnp.bfloat16), (1, 1), "SAME",
            dimension_numbers=("NHWC", "HWIO", "NHWC"),
            preferred_element_type=jnp.float32)
        return jnp.maximum(y + b.reshape(1, 1, 1, -1), 0.0)

    def pool(x):
        return lax.reduce_window(x, -jnp.inf, lax.max,
                                 (1, 2, 2, 1), (1, 2, 2, 1), "VALID")

    x = jnp.transpose(x_nchw, (0, 2, 3, 1))
    x = pool(conv_relu(x, w1, b1))
    x = pool(conv_relu(x, w2, b2))
    return jnp.transpose(x, (0, 3, 1, 2))


if __name__ == "__main__":
    key = jax.random.PRNGKey(0)

    # Small VGG-style feature stack: Conv(3->8)+ReLU, Pool, Conv(8->16)+ReLU, Pool.
    N, Cin, H, W = 4, 3, 16, 16
    C1, C2 = 8, 16

    key, k1, k2, k3, k4, kx = jax.random.split(key, 6)
    n1 = 3 * 3 * C1   # matches VGG._initialize_weights fan-out
    n2 = 3 * 3 * C2
    w1 = jax.random.normal(k1, (3, 3, Cin, C1), jnp.float32) * np.sqrt(2.0 / n1)
    b1 = jax.random.normal(k2, (C1,), jnp.float32) * 0.1
    w2 = jax.random.normal(k3, (3, 3, C1, C2), jnp.float32) * np.sqrt(2.0 / n2)
    b2 = jax.random.normal(k4, (C2,), jnp.float32) * 0.1
    x = jax.random.normal(kx, (N, Cin, H, W), jnp.float32)

    params = pack_vgg_params(w1, b1, w2, b2, H, W)   # host-side packing, once

    out = jax.block_until_ready(vgg_features_forward(x, params))
    ref = jax.block_until_ready(reference_forward(x, w1, b1, w2, b2))

    assert out.shape == ref.shape == (N, C2, H // 4, W // 4), (out.shape, ref.shape)
    err = float(np.max(np.abs(np.asarray(out) - np.asarray(ref))))
    # Tolerance sized for bf16 matmul inputs with f32 accumulation.
    assert np.allclose(np.asarray(out), np.asarray(ref), atol=1e-2, rtol=1e-2), err

    print("KERNEL_OK")
</pallas_src>

<mosaic_0001>
module attributes {stable_mosaic.version = 11 : i64} {
  func.func @_vgg_features_kernel(%arg0: i32, %arg1: memref<2x16x48xf32, #tpu.memory_space<vmem>>, %arg2: memref<144x128xbf16, #tpu.memory_space<vmem>>, %arg3: memref<1x128xf32, #tpu.memory_space<vmem>>, %arg4: memref<192x128xbf16, #tpu.memory_space<vmem>>, %arg5: memref<1x128xf32, #tpu.memory_space<vmem>>, %arg6: memref<2x128x64xbf16, #tpu.memory_space<vmem>>, %arg7: memref<2x128x64xf32, #tpu.memory_space<vmem>>, %arg8: memref<1x2x256xf32, #tpu.memory_space<vmem>>, %arg9: memref<32x144xf32, #tpu.memory_space<vmem>>, %arg10: memref<32x128xf32, #tpu.memory_space<vmem>>, %arg11: memref<16x192xf32, #tpu.memory_space<vmem>>, %arg12: memref<16x128xf32, #tpu.memory_space<vmem>>) attributes {dimension_semantics = [#tpu.dimension_semantics<parallel>], iteration_bounds = array<i64: 2>, scalar_prefetch = 0 : i64, scratch_operands = 4 : i64, tpu.core_type = #tpu.core_type<tc>, window_params = [{transform_indices = @transform_0, window_bounds = array<i64: 2, 16, 48>}, {pipeline_mode = #tpu.pipeline_mode<synchronous>, transform_indices = @transform_1, window_bounds = array<i64: 144, 128>}, {pipeline_mode = #tpu.pipeline_mode<synchronous>, transform_indices = @transform_2, window_bounds = array<i64: 1, 128>}, {pipeline_mode = #tpu.pipeline_mode<synchronous>, transform_indices = @transform_3, window_bounds = array<i64: 192, 128>}, {pipeline_mode = #tpu.pipeline_mode<synchronous>, transform_indices = @transform_4, window_bounds = array<i64: 1, 128>}, {pipeline_mode = #tpu.pipeline_mode<synchronous>, transform_indices = @transform_5, window_bounds = array<i64: 2, 128, 64>}, {pipeline_mode = #tpu.pipeline_mode<synchronous>, transform_indices = @transform_6, window_bounds = array<i64: 2, 128, 64>}, {transform_indices = @transform_7, window_bounds = array<i64: 1, 2, 256>}]} {
    %cst = arith.constant 0.000000e+00 : f32
    %0 = vector.broadcast %cst : f32 to vector<1x48xf32>
    %c0 = arith.constant 0 : index
    %c0_0 = arith.constant 0 : index
    %c0_1 = arith.constant 0 : index
    %1 = vector.load %arg1[%c0, %c0_0, %c0_1] : memref<2x16x48xf32, #tpu.memory_space<vmem>>, vector<1x16x48xf32>
    %2 = vector.shape_cast %1 : vector<1x16x48xf32> to vector<16x48xf32>
    %c0_2 = arith.constant 0 : index
    %c0_3 = arith.constant 0 : index
    %3 = vector.load %arg9[%c0_2, %c0_3] : memref<32x144xf32, #tpu.memory_space<vmem>>, vector<1x48xf32>
    tpu.vector_store %arg9[%c0_2, %c0_3], %0 {strides = array<i32>} : memref<32x144xf32, #tpu.memory_space<vmem>>, vector<1x48xf32>,
    %4 = vector.extract_strided_slice %2 {offsets = [0, 0], sizes = [15, 48], strides = [1, 1]} : vector<16x48xf32> to vector<15x48xf32>
    %c1 = arith.constant 1 : index
    %c0_4 = arith.constant 0 : index
    %5 = vector.load %arg9[%c1, %c0_4] : memref<32x144xf32, #tpu.memory_space<vmem>>, vector<15x48xf32>
    tpu.vector_store %arg9[%c1, %c0_4], %4 {strides = array<i32>} : memref<32x144xf32, #tpu.memory_space<vmem>>, vector<15x48xf32>,
    %c0_5 = arith.constant 0 : index
    %c48 = arith.constant 48 : index
    %6 = vector.load %arg9[%c0_5, %c48] : memref<32x144xf32, #tpu.memory_space<vmem>>, vector<16x48xf32>
    tpu.vector_store %arg9[%c0_5, %c48], %2 {strides = array<i32>} : memref<32x144xf32, #tpu.memory_space<vmem>>, vector<16x48xf32>,
    %7 = vector.extract_strided_slice %2 {offsets = [1, 0], sizes = [15, 48], strides = [1, 1]} : vector<16x48xf32> to vector<15x48xf32>
    %c0_6 = arith.constant 0 : index
    %c96 = arith.constant 96 : index
    %8 = vector.load %arg9[%c0_6, %c96] : memref<32x144xf32, #tpu.memory_space<vmem>>, vector<15x48xf32>
    tpu.vector_store %arg9[%c0_6, %c96], %7 {strides = array<i32>} : memref<32x144xf32, #tpu.memory_space<vmem>>, vector<15x48xf32>,
    %c15 = arith.constant 15 : index
    %c96_7 = arith.constant 96 : index
    %9 = vector.load %arg9[%c15, %c96_7] : memref<32x144xf32, #tpu.memory_space<vmem>>, vector<1x48xf32>
    tpu.vector_store %arg9[%c15, %c96_7], %0 {strides = array<i32>} : memref<32x144xf32, #tpu.memory_space<vmem>>, vector<1x48xf32>,
    %c1_8 = arith.constant 1 : index
    %c0_9 = arith.constant 0 : index
    %c0_10 = arith.constant 0 : index
    %10 = vector.load %arg1[%c1_8, %c0_9, %c0_10] : memref<2x16x48xf32, #tpu.memory_space<vmem>>, vector<1x16x48xf32>
    %11 = vector.shape_cast %10 : vector<1x16x48xf32> to vector<16x48xf32>
    %c16 = arith.constant 16 : index
    %c0_11 = arith.constant 0 : index
    %12 = vector.load %arg9[%c16, %c0_11] : memref<32x144xf32, #tpu.memory_space<vmem>>, vector<1x48xf32>
    tpu.vector_store %arg9[%c16, %c0_11], %0 {strides = array<i32>} : memref<32x144xf32, #tpu.memory_space<vmem>>, vector<1x48xf32>,
    %13 = vector.extract_strided_slice %11 {offsets = [0, 0], sizes = [15, 48], strides = [1, 1]} : vector<16x48xf32> to vector<15x48xf32>
    %c17 = arith.constant 17 : index
    %c0_12 = arith.constant 0 : index
    %14 = vector.load %arg9[%c17, %c0_12] : memref<32x144xf32, #tpu.memory_space<vmem>>, vector<15x48xf32>
    tpu.vector_store %arg9[%c17, %c0_12], %13 {strides = array<i32>} : memref<32x144xf32, #tpu.memory_space<vmem>>, vector<15x48xf32>,
    %c16_13 = arith.constant 16 : index
    %c48_14 = arith.constant 48 : index
    %15 = vector.load %arg9[%c16_13, %c48_14] : memref<32x144xf32, #tpu.memory_space<vmem>>, vector<16x48xf32>
    tpu.vector_store %arg9[%c16_13, %c48_14], %11 {strides = array<i32>} : memref<32x144xf32, #tpu.memory_space<vmem>>, vector<16x48xf32>,
    %16 = vector.extract_strided_slice %11 {offsets = [1, 0], sizes = [15, 48], strides = [1, 1]} : vector<16x48xf32> to vector<15x48xf32>
    %c16_15 = arith.constant 16 : index
    %c96_16 = arith.constant 96 : index
    %17 = vector.load %arg9[%c16_15, %c96_16] : memref<32x144xf32, #tpu.memory_space<vmem>>, vector<15x48xf32>
    tpu.vector_store %arg9[%c16_15, %c96_16], %16 {strides = array<i32>} : memref<32x144xf32, #tpu.memory_space<vmem>>, vector<15x48xf32>,
    %c31 = arith.constant 31 : index
    %c96_17 = arith.constant 96 : index
    %18 = vector.load %arg9[%c31, %c96_17] : memref<32x144xf32, #tpu.memory_space<vmem>>, vector<1x48xf32>
    tpu.vector_store %arg9[%c31, %c96_17], %0 {strides = array<i32>} : memref<32x144xf32, #tpu.memory_space<vmem>>, vector<1x48xf32>,
    %c0_18 = arith.constant 0 : index
    %c0_19 = arith.constant 0 : index
    %19 = vector.load %arg9[%c0_18, %c0_19] : memref<32x144xf32, #tpu.memory_space<vmem>>, vector<32x144xf32>
    %20 = arith.truncf %19 : vector<32x144xf32> to vector<32x144xbf16>
    %c0_20 = arith.constant 0 : index
    %c0_21 = arith.constant 0 : index
    %21 = vector.load %arg2[%c0_20, %c0_21] : memref<144x128xbf16, #tpu.memory_space<vmem>>, vector<144x128xbf16>
    %cst_22 = arith.constant dense<0.000000e+00> : vector<32x128xf32>
    %22 = tpu.matmul %20, %21, %cst_22 {dimension_numbers = #tpu.dot_dimension_numbers<[1], [0], [0], [1], [0, 0, 1, 1], [], []>} : vector<32x144xbf16>, vector<144x128xbf16>, vector<32x128xf32> -> vector<32x128xf32>
    %c0_23 = arith.constant 0 : index
    %c0_24 = arith.constant 0 : index
    %23 = vector.load %arg3[%c0_23, %c0_24] : memref<1x128xf32, #tpu.memory_space<vmem>>, vector<1x128xf32>
    %24 = vector.broadcast %23 : vector<1x128xf32> to vector<32x128xf32>
    %25 = arith.addf %22, %24 : vector<32x128xf32>
    %cst_25 = arith.constant 0.000000e+00 : f32
    %26 = vector.broadcast %cst_25 : f32 to vector<32x128xf32>
    %27 = arith.maximumf %25, %26 : vector<32x128xf32>
    %c0_26 = arith.constant 0 : index
    %c0_27 = arith.constant 0 : index
    %28 = vector.load %arg10[%c0_26, %c0_27] : memref<32x128xf32, #tpu.memory_space<vmem>>, vector<32x128xf32>
    tpu.vector_store %arg10[%c0_26, %c0_27], %27 {strides = array<i32>} : memref<32x128xf32, #tpu.memory_space<vmem>>, vector<32x128xf32>,
    %c0_28 = arith.constant 0 : index
    %c0_29 = arith.constant 0 : index
    %29 = tpu.strided_load %arg10[%c0_28, %c0_29] {strides = array<i32: 2, 1>} : memref<32x128xf32, #tpu.memory_space<vmem>>, vector<16x128xf32>
    %c1_30 = arith.constant 1 : index
    %c0_31 = arith.constant 0 : index
    %30 = tpu.strided_load %arg10[%c1_30, %c0_31] {strides = array<i32: 2, 1>} : memref<32x128xf32, #tpu.memory_space<vmem>>, vector<16x128xf32>
    %31 = arith.maximumf %29, %30 : vector<16x128xf32>
    %32 = arith.truncf %31 : vector<16x128xf32> to vector<16x128xbf16>
    %c0_32 = arith.constant 0 : index
    %c0_33 = arith.constant 0 : index
    %c0_34 = arith.constant 0 : index
    %33 = vector.load %arg6[%c0_32, %c0_33, %c0_34] : memref<2x128x64xbf16, #tpu.memory_space<vmem>>, vector<1x128x64xbf16>
    %34 = vector.shape_cast %33 : vector<1x128x64xbf16> to vector<128x64xbf16>
    %cst_35 = arith.constant dense<0.000000e+00> : vector<16x64xf32>
    %35 = tpu.matmul %32, %34, %cst_35 {dimension_numbers = #tpu.dot_dimension_numbers<[1], [0], [0], [1], [0, 0, 1, 1], [], []>} : vector<16x128xbf16>, vector<128x64xbf16>, vector<16x64xf32> -> vector<16x64xf32>
    %c1_36 = arith.constant 1 : index
    %c0_37 = arith.constant 0 : index
    %c0_38 = arith.constant 0 : index
    %36 = vector.load %arg6[%c1_36, %c0_37, %c0_38] : memref<2x128x64xbf16, #tpu.memory_space<vmem>>, vector<1x128x64xbf16>
    %37 = vector.shape_cast %36 : vector<1x128x64xbf16> to vector<128x64xbf16>
    %cst_39 = arith.constant dense<0.000000e+00> : vector<16x64xf32>
    %38 = tpu.matmul %32, %37, %cst_39 {dimension_numbers = #tpu.dot_dimension_numbers<[1], [0], [0], [1], [0, 0, 1, 1], [], []>} : vector<16x128xbf16>, vector<128x64xbf16>, vector<16x64xf32> -> vector<16x64xf32>
    %39 = arith.maximumf %35, %38 : vector<16x64xf32>
    %cst_40 = arith.constant 0.000000e+00 : f32
    %40 = vector.broadcast %cst_40 : f32 to vector<1x64xf32>
    %41 = vector.extract_strided_slice %39 {offsets = [0, 0], sizes = [8, 64], strides = [1, 1]} : vector<16x64xf32> to vector<8x64xf32>
    %c0_41 = arith.constant 0 : index
    %c0_42 = arith.constant 0 : index
    %42 = vector.load %arg11[%c0_41, %c0_42] : memref<16x192xf32, #tpu.memory_space<vmem>>, vector<1x64xf32>
    tpu.vector_store %arg11[%c0_41, %c0_42], %40 {strides = array<i32>} : memref<16x192xf32, #tpu.memory_space<vmem>>, vector<1x64xf32>,
    %43 = vector.extract_strided_slice %41 {offsets = [0, 0], sizes = [7, 64], strides = [1, 1]} : vector<8x64xf32> to vector<7x64xf32>
    %c1_43 = arith.constant 1 : index
    %c0_44 = arith.constant 0 : index
    %44 = vector.load %arg11[%c1_43, %c0_44] : memref<16x192xf32, #tpu.memory_space<vmem>>, vector<7x64xf32>
    tpu.vector_store %arg11[%c1_43, %c0_44], %43 {strides = array<i32>} : memref<16x192xf32, #tpu.memory_space<vmem>>, vector<7x64xf32>,
    %c0_45 = arith.constant 0 : index
    %c64 = arith.constant 64 : index
    %45 = vector.load %arg11[%c0_45, %c64] : memref<16x192xf32, #tpu.memory_space<vmem>>, vector<8x64xf32>
    tpu.vector_store %arg11[%c0_45, %c64], %41 {strides = array<i32>} : memref<16x192xf32, #tpu.memory_space<vmem>>, vector<8x64xf32>,
    %46 = vector.extract_strided_slice %41 {offsets = [1, 0], sizes = [7, 64], strides = [1, 1]} : vector<8x64xf32> to vector<7x64xf32>
    %c0_46 = arith.constant 0 : index
    %c128 = arith.constant 128 : index
    %47 = vector.load %arg11[%c0_46, %c128] : memref<16x192xf32, #tpu.memory_space<vmem>>, vector<7x64xf32>
    tpu.vector_store %arg11[%c0_46, %c128], %46 {strides = array<i32>} : memref<16x192xf32, #tpu.memory_space<vmem>>, vector<7x64xf32>,
    %c7 = arith.constant 7 : index
    %c128_47 = arith.constant 128 : index
    %48 = vector.load %arg11[%c7, %c128_47] : memref<16x192xf32, #tpu.memory_space<vmem>>, vector<1x64xf32>
    tpu.vector_store %arg11[%c7, %c128_47], %40 {strides = array<i32>} : memref<16x192xf32, #tpu.memory_space<vmem>>, vector<1x64xf32>,
    %49 = vector.extract_strided_slice %39 {offsets = [8, 0], sizes = [8, 64], strides = [1, 1]} : vector<16x64xf32> to vector<8x64xf32>
    %c8 = arith.constant 8 : index
    %c0_48 = arith.constant 0 : index
    %50 = vector.load %arg11[%c8, %c0_48] : memref<16x192xf32, #tpu.memory_space<vmem>>, vector<1x64xf32>
    tpu.vector_store %arg11[%c8, %c0_48], %40 {strides = array<i32>} : memref<16x192xf32, #tpu.memory_space<vmem>>, vector<1x64xf32>,
    %51 = vector.extract_strided_slice %49 {offsets = [0, 0], sizes = [7, 64], strides = [1, 1]} : vector<8x64xf32> to vector<7x64xf32>
    %c9 = arith.constant 9 : index
    %c0_49 = arith.constant 0 : index
    %52 = vector.load %arg11[%c9, %c0_49] : memref<16x192xf32, #tpu.memory_space<vmem>>, vector<7x64xf32>
    tpu.vector_store %arg11[%c9, %c0_49], %51 {strides = array<i32>} : memref<16x192xf32, #tpu.memory_space<vmem>>, vector<7x64xf32>,
    %c8_50 = arith.constant 8 : index
    %c64_51 = arith.constant 64 : index
    %53 = vector.load %arg11[%c8_50, %c64_51] : memref<16x192xf32, #tpu.memory_space<vmem>>, vector<8x64xf32>
    tpu.vector_store %arg11[%c8_50, %c64_51], %49 {strides = array<i32>} : memref<16x192xf32, #tpu.memory_space<vmem>>, vector<8x64xf32>,
    %54 = vector.extract_strided_slice %49 {offsets = [1, 0], sizes = [7, 64], strides = [1, 1]} : vector<8x64xf32> to vector<7x64xf32>
    %c8_52 = arith.constant 8 : index
    %c128_53 = arith.constant 128 : index
    %55 = vector.load %arg11[%c8_52, %c128_53] : memref<16x192xf32, #tpu.memory_space<vmem>>, vector<7x64xf32>
    tpu.vector_store %arg11[%c8_52, %c128_53], %54 {strides = array<i32>} : memref<16x192xf32, #tpu.memory_space<vmem>>, vector<7x64xf32>,
    %c15_54 = arith.constant 15 : index
    %c128_55 = arith.constant 128 : index
    %56 = vector.load %arg11[%c15_54, %c128_55] : memref<16x192xf32, #tpu.memory_space<vmem>>, vector<1x64xf32>
    tpu.vector_store %arg11[%c15_54, %c128_55], %40 {strides = array<i32>} : memref<16x192xf32, #tpu.memory_space<vmem>>, vector<1x64xf32>,
    %c0_56 = arith.constant 0 : index
    %c0_57 = arith.constant 0 : index
    %57 = vector.load %arg11[%c0_56, %c0_57] : memref<16x192xf32, #tpu.memory_space<vmem>>, vector<16x192xf32>
    %58 = arith.truncf %57 : vector<16x192xf32> to vector<16x192xbf16>
    %c0_58 = arith.constant 0 : index
    %c0_59 = arith.constant 0 : index
    %59 = vector.load %arg4[%c0_58, %c0_59] : memref<192x128xbf16, #tpu.memory_space<vmem>>, vector<192x128xbf16>
    %cst_60 = arith.constant dense<0.000000e+00> : vector<16x128xf32>
    %60 = tpu.matmul %58, %59, %cst_60 {dimension_numbers = #tpu.dot_dimension_numbers<[1], [0], [0], [1], [0, 0, 1, 1], [], []>} : vector<16x192xbf16>, vector<192x128xbf16>, vector<16x128xf32> -> vector<16x128xf32>
    %c0_61 = arith.constant 0 : index
    %c0_62 = arith.constant 0 : index
    %61 = vector.load %arg5[%c0_61, %c0_62] : memref<1x128xf32, #tpu.memory_space<vmem>>, vector<1x128xf32>
    %62 = vector.broadcast %61 : vector<1x128xf32> to vector<16x128xf32>
    %63 = arith.addf %60, %62 : vector<16x128xf32>
    %cst_63 = arith.constant 0.000000e+00 : f32
    %64 = vector.broadcast %cst_63 : f32 to vector<16x128xf32>
    %65 = arith.maximumf %63, %64 : vector<16x128xf32>
    %c0_64 = arith.constant 0 : index
    %c0_65 = arith.constant 0 : index
    %66 = vector.load %arg12[%c0_64, %c0_65] : memref<16x128xf32, #tpu.memory_space<vmem>>, vector<16x128xf32>
    tpu.vector_store %arg12[%c0_64, %c0_65], %65 {strides = array<i32>} : memref<16x128xf32, #tpu.memory_space<vmem>>, vector<16x128xf32>,
    %c0_66 = arith.constant 0 : index
    %c0_67 = arith.constant 0 : index
    %67 = tpu.strided_load %arg12[%c0_66, %c0_67] {strides = array<i32: 2, 1>} : memref<16x128xf32, #tpu.memory_space<vmem>>, vector<8x128xf32>
    %c1_68 = arith.constant 1 : index
    %c0_69 = arith.constant 0 : index
    %68 = tpu.strided_load %arg12[%c1_68, %c0_69] {strides = array<i32: 2, 1>} : memref<16x128xf32, #tpu.memory_space<vmem>>, vector<8x128xf32>
    %69 = arith.maximumf %67, %68 : vector<8x128xf32>
    %c0_70 = arith.constant 0 : index
    %c0_71 = arith.constant 0 : index
    %c0_72 = arith.constant 0 : index
    %70 = vector.load %arg7[%c0_70, %c0_71, %c0_72] : memref<2x128x64xf32, #tpu.memory_space<vmem>>, vector<1x128x64xf32>
    %71 = vector.shape_cast %70 : vector<1x128x64xf32> to vector<128x64xf32>
    %cst_73 = arith.constant dense<0.000000e+00> : vector<8x64xf32>
    %72 = tpu.matmul %69, %71, %cst_73 {dimension_numbers = #tpu.dot_dimension_numbers<[1], [0], [0], [1], [0, 0, 1, 1], [], []>} : vector<8x128xf32>, vector<128x64xf32>, vector<8x64xf32> -> vector<8x64xf32>
    %c1_74 = arith.constant 1 : index
    %c0_75 = arith.constant 0 : index
    %c0_76 = arith.constant 0 : index
    %73 = vector.load %arg7[%c1_74, %c0_75, %c0_76] : memref<2x128x64xf32, #tpu.memory_space<vmem>>, vector<1x128x64xf32>
    %74 = vector.shape_cast %73 : vector<1x128x64xf32> to vector<128x64xf32>
    %cst_77 = arith.constant dense<0.000000e+00> : vector<8x64xf32>
    %75 = tpu.matmul %69, %74, %cst_77 {dimension_numbers = #tpu.dot_dimension_numbers<[1], [0], [0], [1], [0, 0, 1, 1], [], []>} : vector<8x128xf32>, vector<128x64xf32>, vector<8x64xf32> -> vector<8x64xf32>
    %76 = arith.maximumf %72, %75 : vector<8x64xf32>
    %77 = vector.extract_strided_slice %76 {offsets = [0, 0], sizes = [1, 64], strides = [1, 1]} : vector<8x64xf32> to vector<1x64xf32>
    %78 = vector.extract_strided_slice %76 {offsets = [1, 0], sizes = [1, 64], strides = [1, 1]} : vector<8x64xf32> to vector<1x64xf32>
    %79 = vector.extract_strided_slice %76 {offsets = [2, 0], sizes = [1, 64], strides = [1, 1]} : vector<8x64xf32> to vector<1x64xf32>
    %80 = vector.extract_strided_slice %76 {offsets = [3, 0], sizes = [1, 64], strides = [1, 1]} : vector<8x64xf32> to vector<1x64xf32>
    %81 = tpu.concatenate %77, %78, %79, %80 in 1 : vector<1x64xf32>, vector<1x64xf32>, vector<1x64xf32>, vector<1x64xf32> -> vector<1x256xf32>
    %82 = vector.extract_strided_slice %76 {offsets = [4, 0], sizes = [1, 64], strides = [1, 1]} : vector<8x64xf32> to vector<1x64xf32>
    %83 = vector.extract_strided_slice %76 {offsets = [5, 0], sizes = [1, 64], strides = [1, 1]} : vector<8x64xf32> to vector<1x64xf32>
    %84 = vector.extract_strided_slice %76 {offsets = [6, 0], sizes = [1, 64], strides = [1, 1]} : vector<8x64xf32> to vector<1x64xf32>
    %85 = vector.extract_strided_slice %76 {offsets = [7, 0], sizes = [1, 64], strides = [1, 1]} : vector<8x64xf32> to vector<1x64xf32>
    %86 = tpu.concatenate %82, %83, %84, %85 in 1 : vector<1x64xf32>, vector<1x64xf32>, vector<1x64xf32>, vector<1x64xf32> -> vector<1x256xf32>
    %87 = tpu.concatenate %81, %86 in 0 : vector<1x256xf32>, vector<1x256xf32> -> vector<2x256xf32>
    %c0_78 = arith.constant 0 : index
    %c0_79 = arith.constant 0 : index
    %c0_80 = arith.constant 0 : index
    %88 = vector.load %arg8[%c0_78, %c0_79, %c0_80] : memref<1x2x256xf32, #tpu.memory_space<vmem>>, vector<1x2x256xf32>
    %89 = vector.shape_cast %88 : vector<1x2x256xf32> to vector<2x256xf32>
    %90 = vector.shape_cast %87 : vector<2x256xf32> to vector<1x2x256xf32>
    tpu.vector_store %arg8[%c0_78, %c0_79, %c0_80], %90 {strides = array<i32>} : memref<1x2x256xf32, #tpu.memory_space<vmem>>, vector<1x2x256xf32>,
    return
  }
  func.func @transform_0(%arg0: i32) -> (i32, i32, i32) {
    %c0_i32 = arith.constant 0 : i32
    %c0_i32_0 = arith.constant 0 : i32
    %c0_i32_1 = arith.constant 0 : i32
    return %arg0, %c0_i32, %c0_i32_0 : i32, i32, i32
  }
  func.func @transform_1(%arg0: i32) -> (i32, i32) {
    %c0_i32 = arith.constant 0 : i32
    %c0_i32_0 = arith.constant 0 : i32
    %c0_i32_1 = arith.constant 0 : i32
    return %c0_i32, %c0_i32_0 : i32, i32
  }
  func.func @transform_2(%arg0: i32) -> (i32, i32) {
    %c0_i32 = arith.constant 0 : i32
    %c0_i32_0 = arith.constant 0 : i32
    %c0_i32_1 = arith.constant 0 : i32
    return %c0_i32, %c0_i32_0 : i32, i32
  }
  func.func @transform_3(%arg0: i32) -> (i32, i32) {
    %c0_i32 = arith.constant 0 : i32
    %c0_i32_0 = arith.constant 0 : i32
    %c0_i32_1 = arith.constant 0 : i32
    return %c0_i32, %c0_i32_0 : i32, i32
  }
  func.func @transform_4(%arg0: i32) -> (i32, i32) {
    %c0_i32 = arith.constant 0 : i32
    %c0_i32_0 = arith.constant 0 : i32
    %c0_i32_1 = arith.constant 0 : i32
    return %c0_i32, %c0_i32_0 : i32, i32
  }
  func.func @transform_5(%arg0: i32) -> (i32, i32, i32) {
    %c0_i32 = arith.constant 0 : i32
    %c0_i32_0 = arith.constant 0 : i32
    %c0_i32_1 = arith.constant 0 : i32
    %c0_i32_2 = arith.constant 0 : i32
    return %c0_i32, %c0_i32_0, %c0_i32_1 : i32, i32, i32
  }
  func.func @transform_6(%arg0: i32) -> (i32, i32, i32) {
    %c0_i32 = arith.constant 0 : i32
    %c0_i32_0 = arith.constant 0 : i32
    %c0_i32_1 = arith.constant 0 : i32
    %c0_i32_2 = arith.constant 0 : i32
    return %c0_i32, %c0_i32_0, %c0_i32_1 : i32, i32, i32
  }
  func.func @transform_7(%arg0: i32) -> (i32, i32, i32) {
    %c0_i32 = arith.constant 0 : i32
    %c0_i32_0 = arith.constant 0 : i32
    %c0_i32_1 = arith.constant 0 : i32
    return %arg0, %c0_i32, %c0_i32_0 : i32, i32, i32
  }
}

</mosaic_0001>

<bundles_post_ra>
// kernel: vgg_features_forward.1
= control target key start
LH: loop header
LB: loop body
LE: loop exit
PB: predicated region body
PF: predicated region fallthrough
CT: control target
= control target key end

     0   :  { %s1607_s24 = smov 0   ;;  %s1954_s0 = inlined_call_operand.vmem [shape: f32[4,16,48], index: 0, kind: input, shape index: {}]   ;;  %s1955_s1 = inlined_call_operand.vmem [shape: bf16[144,128], index: 1, kind: input, shape index: {}]   ;;  %s1956_s2 = inlined_call_operand.vmem [shape: f32[1,128], index: 2, kind: input, shape index: {}]   ;;  %s1957_s3 = inlined_call_operand.vmem [shape: bf16[192,128], index: 3, kind: input, shape index: {}]   ;;  %s1958_s4 = inlined_call_operand.vmem [shape: f32[1,128], index: 4, kind: input, shape index: {}]   ;;  %s1959_s5 = inlined_call_operand.vmem [shape: bf16[2,128,64], index: 5, kind: input, shape index: {}]   ;;  %s1960_s6 = inlined_call_operand.vmem [shape: f32[2,128,64], index: 6, kind: input, shape index: {}]   ;;  %s1961_s7 = inlined_call_operand.vmem [shape: f32[2,2,256], index: 7, kind: output, shape index: {}]  }
   0x1 LB: > { %s1613_s25 = sadd.s32 4294967295, %s1558_s24   ;;  %p1203_p0 = scmp.ge.s32.totalorder %s1558_s24, 1  ;;  %s1558_s24 = sphi %s1607_s24, %s17_s24  }
   0x2   : > { %p239_p1 = scmp.lt.s32.totalorder %s1558_s24, 3 }
   0x4   : > { %p240_p2 = pnand %p1203_p0, %p239_p1 }
   0x5   : > { %s1204_s26 = sshll.u32 (!%p240_p2), %s1613_s25, 1  ;;  %v1515_v0 = vld [vmem:[%s1955_s1] sm:$0xff] (!%p240_p2)   ;;  %v1560_v1 = vmov (!%p240_p2), 0   ;;  %v1516_v2 = vld [vmem:[%s1955_s1 + $0x8] sm:$0xff] (!%p240_p2)   ;;  %vm287_vm0 = vcmask (!%p240_p2), 385024   ;;  %v1561_v3 = vmov (!%p240_p2), 0.0  }
   0x6   : > { %243 = sbr.rel (%p240_p2) target bundleno = 1328 (0x530), region = 48  ;;  %p273_p3 = scmp.lt.s32.totalorder (!%p240_p2), %s1204_s26, 3  ;;  %465 = vmatprep.subr.bf16.mxu0 (!%p240_p2), %v1560_v1  ;;  %288 = vst.msk [vmem:[#allocation2] sm:$0x1] (!%p240_p2), %vm287_vm0, %v1561_v3  ;;  %335 = vst.msk [vmem:[#allocation2 + $0x20] sm:$0x1] (!%p240_p2), %vm287_vm0, %v1561_v3  ;;  %1342 = vmatprep.subr.bf16.mxu1 (!%p240_p2), %v1561_v3 }
   0x7   : > { %466 = vmatpush1.bf16.msra.mxu0 (!%p240_p2), %v1515_v0  ;;  %vm297_vm1 = vcmask (!%p240_p2), 392193   ;;  %v1517_v4 = vld [vmem:[%s1955_s1 + $0x10] sm:$0xff] (!%p240_p2)   ;;  %vm310_vm2 = vcmask (!%p240_p2), 1046528   ;;  %vm291_vm3 = vcmask (!%p240_p2), 1040384   ;;  %vm299_vm4 = vcmask (!%p240_p2), 392192   ;;  %s1562_s14 = smov (!%p240_p2), 48  }
   0x8   : > { %467 = vmatprep.subr.bf16.mxu0 (!%p240_p2), %v1560_v1  ;;  %s1563_s15 = smov (!%p240_p2), 96   ;;  %v1518_v15 = vld [vmem:[%s1955_s1 + $0x18] sm:$0xff] (!%p240_p2)   ;;  %v1519_v21 = vld [vmem:[%s1955_s1 + $0x20] sm:$0xff] (!%p240_p2)   ;;  %vm330_vm5 = vcmask (!%p240_p2), 122880   ;;  %v1520_v22 = vld [vmem:[%s1955_s1 + $0x28] sm:$0xff] (!%p240_p2)   ;;  %vm307_vm6 = vcmask (!%p240_p2), 785792  }
   0x9   : > { %331 = vst.msk [vmem:[#allocation2 + $0x1f] sm:$0x1] (!%p240_p2), %vm330_vm5, %v1561_v3  ;;  %367 = vst.msk [vmem:[#allocation2 + $0x3f] sm:$0x1] (!%p240_p2), %vm330_vm5, %v1561_v3  ;;  %v1521_v24 = vld [vmem:[%s1955_s1 + $0x30] sm:$0xff] (!%p240_p2)   ;;  %v1524_v25 = vld [vmem:[%s1959_s5] sm:$0xff] (!%p240_p2)  }
   0xa   : > { %v1525_v26 = vld [vmem:[%s1959_s5 + $0x8] sm:$0xff] (!%p240_p2)   ;;  %1343 = vmatpush3.bf16.msra.mxu1 (!%p240_p2), %v1524_v25  ;;  %v1522_v27 = vld [vmem:[%s1955_s1 + $0x38] sm:$0xff] (!%p240_p2)   ;;  %v1523_v28 = vld [vmem:[%s1955_s1 + $0x40] sm:$0xff] (!%p240_p2)   ;;  %vm326_vm7 = vcmask (!%p240_p2), 129024   ;;  %vm324_vm8 = vcmask (!%p240_p2), 1047296   ;;  %vm328_vm9 = vcmask (!%p240_p2), 1041152  }
   0xb   : > { %468 = vmatpush1.bf16.msra.mxu0 (!%p240_p2), %v1516_v2  ;;  %1344 = vmatprep.subr.bf16.mxu1 (!%p240_p2), %v1561_v3  ;;  %vm320_vm10 = vcmask (!%p240_p2), 1048320   ;;  %vm322_vm11 = vcmask (!%p240_p2), 130048   ;;  %v1526_v49 = vld [vmem:[%s1959_s5 + $0x10] sm:$0xff] (!%p240_p2)   ;;  %v1527_v50 = vld [vmem:[%s1959_s5 + $0x18] sm:$0xff] (!%p240_p2)   ;;  %v1528_v51 = vld [vmem:[%s1959_s5 + $0x20] sm:$0xff] (!%p240_p2)   ;;  %vm1564_vm12 = vmmov (!%p240_p2), 0  }
   0xc   : > { %469 = vmatprep.subr.bf16.mxu0 (!%p240_p2), %v1560_v1  ;;  %v1529_v52 = vld [vmem:[%s1959_s5 + $0x28] sm:$0xff] (!%p240_p2)   ;;  %v1530_v53 = vld [vmem:[%s1959_s5 + $0x30] sm:$0xff] (!%p240_p2)   ;;  %1358 = vmatprep.mubr.msk.bf16.mxu1 (!%p240_p2), %vm1564_vm12, %v1561_v3  ;;  %v1531_v54 = vld [vmem:[%s1959_s5 + $0x38] sm:$0xff] (!%p240_p2)   ;;  %vm745_vm13 = vcmask (!%p240_p2), 516096   ;;  %vm750_vm14 = vcmask (!%p240_p2), 523265   ;;  %vm759_vm15 = vcmask (!%p240_p2), 522240  }
   0xd   : > { %s1963_s26 = smov (!%p273_p3, %s1204_s26), 3  ;;  %v1211_v55 = vld [vmem:[%s1956_s2] ss:$0 sm:$0xff]  ;;  %761 = vst.msk [vmem:[#allocation4 + $0xf] sm:$0x1] %vm745_vm13, %v1561_v3  ;;  %s1565_s29 = smov 64  }
   0xe   : > { %s1288_s8 = sshll.u32 %s1963_s26, 4  ;;  %1345 = vmatpush3.bf16.msra.mxu1 %v1525_v26  ;;  %774 = vst.msk [vmem:[#allocation4 + $0x1f] sm:$0x1] %vm745_vm13, %v1561_v3  ;;  %746 = vst.msk [vmem:[#allocation4] sm:$0x1] %vm745_vm13, %v1561_v3  ;;  %v1540_v25 = vld [vmem:[%s1957_s3] sm:$0xff]  }
   0xf   : > { %s277_s11 = scalar_lea.vmem %s1954_s0, %s1288_s8  ;;  %470 = vmatpush1.bf16.msra.mxu0 %v1517_v4  ;;  %1346 = vmatprep.subr.bf16.mxu1 %v1561_v3  ;;  %762 = vst.msk [vmem:[#allocation4 + $0x10] sm:$0x1] %vm745_vm13, %v1561_v3  ;;  %v1541_v26 = vld [vmem:[%s1957_s3 + $0x8] sm:$0xff]   ;;  %vm884_vm0 = vcmask 523264   ;;  %p279_p4 = scmp.lt.s32.totalorder %s1613_s25, 1 }
  0x10   : > { %v285_v5 = vld [vmem:[%s277_s11] sm:$0xff]  ;;  %v286_v6 = vld [vmem:[%s277_s11 + $0x8] sm:$0xff]  ;;  %v1209_v11 = vld [vmem:[%s277_s11 + $0x10] sm:$0xff]  ;;  %471 = vmatprep.subr.bf16.mxu0 %v1560_v1 }
  0x11   : > { %301 = vrot.lane.b32.xlu0 %v285_v5, %s1562_s14  ;;  %v292_v7 = vrot.slane %v285_v5, 7  ;;  %v311_v8 = vrot.slane %v285_v5, 1  ;;  %v312_v9 = vrot.slane %v286_v6, 1  ;;  %v293_v10 = vrot.slane %v286_v6, 7  ;;  %v1210_v12 = vld [vmem:[%s277_s11 + $0x18] sm:$0xff]  ;;  %s1965_s25 = smov (!%p279_p4, %s1613_s25), 1 }
  0x12   : > { %v338_v13 = vrot.slane %v1209_v11, 7  ;;  %v339_v14 = vrot.slane %v1210_v12, 7  ;;  %v353_v18 = vrot.slane %v1209_v11, 1  ;;  %v354_v20 = vrot.slane %v1210_v12, 1  ;;  %1347 = vmatpush3.bf16.msra.mxu1 %v1526_v49  ;;  %s1289_s9 = sshll.u32 %s1965_s25, 2 }
  0x13   : > { %298 = vst.msk [vmem:[#allocation2] sm:$0xfe] %vm297_vm1, %v292_v7  ;;  %316 = vrot.lane.b32.xlu1 %v312_v9, %s1563_s15  ;;  %v294_v16 = vsel %vm291_vm3, %v292_v7, %v293_v10  ;;  %v313_v17 = vsel %vm310_vm2, %v311_v8, %v312_v9  ;;  %472 = vmatpush1.bf16.msra.mxu0 %v1518_v15  ;;  %s283_s12 = scalar_lea.vmem %s1961_s7, %s1289_s9 }
  0x14   : > { %343 = vst.msk [vmem:[#allocation2 + $0x20] sm:$0xfe] %vm297_vm1, %v338_v13  ;;  %v340_v19 = vsel %vm291_vm3, %v338_v13, %v339_v14  ;;  %473 = vmatprep.subr.bf16.mxu0 %v1560_v1  ;;  %v355_v23 = vsel %vm310_vm2, %v353_v18, %v354_v20  ;;  %1348 = vmatprep.subr.bf16.mxu1 %v1561_v3  ;;  %v1533_v18 = vld [vmem:[%s1959_s5 + $0x48] sm:$0xff]   ;;  %vm755_vm1 = vcmask 1048064  }
  0x15   : > { %300 = vst.msk [vmem:[#allocation2 + $0x10] sm:$0xff] %vm299_vm4, %v294_v16  ;;  %303 = vrot.lane.b32.xlu0 %v286_v6, %s1562_s14  ;;  %344 = vst.msk [vmem:[#allocation2 + $0x30] sm:$0xff] %vm299_vm4, %v340_v19  ;;  %v1532_v16 = vld [vmem:[%s1959_s5 + $0x40] sm:$0xff]   ;;  %v1534_v19 = vld [vmem:[%s1959_s5 + $0x50] sm:$0xff]  }
  0x16   : > { %1349 = vmatpush3.bf16.msra.mxu1 %v1527_v50  ;;  %v1566_v50 = vmov 0.0|0.0  }
  0x17   : > { %314 = vrot.lane.b32.xlu1 %v313_v17, %s1563_s15  ;;  %474 = vmatpush1.bf16.msra.mxu0 %v1519_v21  ;;  %v1536_v21 = vld [vmem:[%s1959_s5 + $0x60] sm:$0xff]  }
  0x18   : > { %475 = vmatprep.subr.bf16.mxu0 %v1560_v1  ;;  %1350 = vmatprep.subr.bf16.mxu1 %v1561_v3 }
  0x19   : > { %345 = vrot.lane.b32.xlu0 %v1209_v11, %s1562_s14 }
  0x1a   : > { %1351 = vmatpush3.bf16.msra.mxu1 %v1528_v51 }
  0x1b   : > { %347 = vrot.lane.b32.xlu1 %v1210_v12, %s1562_s14  ;;  %476 = vmatpush1.bf16.msra.mxu0 %v1520_v22  ;;  %v1537_v22 = vld [vmem:[%s1959_s5 + $0x68] sm:$0xff]  }
  0x1c   : > { %477 = vmatprep.subr.bf16.mxu0 %v1560_v1  ;;  %1352 = vmatprep.subr.bf16.mxu1 %v1561_v3 }
  0x1d   : > { %356 = vrot.lane.b32.xlu0 %v355_v23, %s1563_s15  ;;  %v1538_v23 = vld [vmem:[%s1959_s5 + $0x70] sm:$0xff]  }
  0x1e   : > { %1353 = vmatpush3.bf16.msra.mxu1 %v1529_v52  ;;  %v939_v52 = vld [vmem:[%s1960_s6 + $0x10] sm:$0xff] }
  0x1f   : > { %358 = vrot.lane.b32.xlu1 %v354_v20, %s1563_s15  ;;  %478 = vmatpush1.bf16.msra.mxu0 %v1521_v24  ;;  %v1535_v20 = vld [vmem:[%s1959_s5 + $0x58] sm:$0xff]  }
  0x20   : > { %479 = vmatprep.subr.bf16.mxu0 %v1560_v1  ;;  %1354 = vmatprep.subr.bf16.mxu1 %v1561_v3  ;;  %v1539_v24 = vld [vmem:[%s1959_s5 + $0x78] sm:$0xff]  }
  0x22   : > { %1355 = vmatpush3.bf16.msra.mxu1 %v1530_v53  ;;  %v940_v53 = vld [vmem:[%s1960_s6 + $0x18] sm:$0xff] }
  0x23   : > { %480 = vmatpush1.bf16.msra.mxu0 %v1522_v27  ;;  %1356 = vmatprep.subr.bf16.mxu1 %v1561_v3  ;;  %v1542_v27 = vld [vmem:[%s1957_s3 + $0x10] sm:$0xff]  }
  0x24   : > { %481 = vmatprep.subr.bf16.mxu0 %v1560_v1 }
  0x26   : > { %1357 = vmatpush3.bf16.msra.mxu1 %v1531_v54 }
  0x27   : > { %482 = vmatpush1.bf16.msra.mxu0 %v1523_v28  ;;  %1362 = vmatprep.subr.bf16.mxu1 %v1561_v3  ;;  %v1543_v28 = vld [vmem:[%s1957_s3 + $0x18] sm:$0xff]  }
  0x28   : > { %888 = vmatprep.subr.bf16.mxu0 %v1560_v1 }
  0x83   : > { %v302_v29 = vpop.permute.xlu0 %301 }
  0x84   : > { %308 = vst.msk [vmem:[#allocation2] sm:$0xff] %vm307_vm6, %v302_v29  ;;  %v1544_v29 = vld [vmem:[%s1957_s3 + $0x20] sm:$0xff]  }
  0x85   : > { %v317_v30 = vpop.permute.xlu1 %316 }
  0x86   : > { %327 = vst.msk [vmem:[#allocation2 + $0x18] sm:$0x7f] %vm326_vm7, %v317_v30 }
  0x87   : > { %v304_v31 = vpop.permute.xlu0 %303 }
  0x88   : > { %309 = vst.msk [vmem:[#allocation2 + $0x10] sm:$0xff] %vm307_vm6, %v304_v31  ;;  %v1546_v31 = vld [vmem:[%s1957_s3 + $0x30] sm:$0xff]  }
  0x89   : > { %325 = vst.msk [vmem:[#allocation2 + $0x10] sm:$0x7f] %vm324_vm8, %v317_v30  ;;  %v315_v32 = vpop.permute.xlu1 %314  ;;  %v1545_v30 = vld [vmem:[%s1957_s3 + $0x28] sm:$0xff]  }
  0x8a   : > { %329 = vst.msk [vmem:[#allocation2 + $0x17] sm:$0x1] %vm328_vm9, %v1561_v3 }
  0x8b   : > { %321 = vst.msk [vmem:[#allocation2] sm:$0xff] %vm320_vm10, %v315_v32  ;;  %v346_v33 = vpop.permute.xlu0 %345 }
  0x8c   : > { %323 = vst.msk [vmem:[#allocation2 + $0x8] sm:$0xff] %vm322_vm11, %v315_v32  ;;  %v1547_v32 = vld [vmem:[%s1957_s3 + $0x38] sm:$0xff]  }
  0x8d   : > { %351 = vst.msk [vmem:[#allocation2 + $0x20] sm:$0xff] %vm307_vm6, %v346_v33  ;;  %v348_v34 = vpop.permute.xlu1 %347  ;;  %v371_v39 = vld [vmem:[#allocation2 + $0x18] sm:$0xff]  ;;  %v1548_v33 = vld [vmem:[%s1957_s3 + $0x40] sm:$0xff]  }
  0x8e   : > { %352 = vst.msk [vmem:[#allocation2 + $0x30] sm:$0xff] %vm307_vm6, %v348_v34 }
  0x8f   : > { %366 = vst.msk [vmem:[#allocation2 + $0x37] sm:$0x1] %vm328_vm9, %v1561_v3  ;;  %v357_v35 = vpop.permute.xlu0 %356 }
  0x90   : > { %362 = vst.msk [vmem:[#allocation2 + $0x20] sm:$0xff] %vm320_vm10, %v357_v35 }
  0x91   : > { %363 = vst.msk [vmem:[#allocation2 + $0x28] sm:$0xff] %vm322_vm11, %v357_v35  ;;  %v370_v36 = vld [vmem:[#allocation2 + $0x10] sm:$0xff]  ;;  %v359_v37 = vpop.permute.xlu1 %358 }
  0x92   : > { %v368_v40 = vld [vmem:[#allocation2] sm:$0xff]  ;;  %364 = vst.msk [vmem:[#allocation2 + $0x30] sm:$0x7f] %vm324_vm8, %v359_v37 }
  0x93   : > { %v369_v38 = vld [vmem:[#allocation2 + $0x8] sm:$0xff]  ;;  %365 = vst.msk [vmem:[#allocation2 + $0x38] sm:$0x7f] %vm326_vm7, %v359_v37  ;;  %v376_v42 = vpack.c.bf16 %v370_v36, %v368_v40  ;;  %v1551_v40 = vld [vmem:[%s1957_s3 + $0x58] sm:$0xff]  }
  0x94   : > { %v377_v41 = vpack.c.bf16 %v371_v39, %v369_v38  ;;  %v1549_v38 = vld [vmem:[%s1957_s3 + $0x48] sm:$0xff]   ;;  %v1550_v39 = vld [vmem:[%s1957_s3 + $0x50] sm:$0xff]  }
  0x96   : > { %1221 = vmatprep.mubr.msk.bf16.mxu0 %vm322_vm11, %v377_v41 }
  0x97   : > { %498 = vmatmul.mubr.bf16.vlgmr.msra.gmra.mrb[0].mxu0 %v376_v42  ;;  %v372_v44 = vld [vmem:[#allocation2 + $0x20] sm:$0xff] }
  0x98   : > { %v373_v43 = vld [vmem:[#allocation2 + $0x28] sm:$0xff]  ;;  %889 = vmatpush1.bf16.msra.mxu0 %v1540_v25 }
  0x99   : > { %v374_v46 = vld [vmem:[#allocation2 + $0x30] sm:$0xff]  ;;  %890 = vmatprep.subr.bf16.mxu0 %v1560_v1 }
  0x9a   : > { %v375_v45 = vld [vmem:[#allocation2 + $0x38] sm:$0xff]  ;;  %v378_v48 = vpack.c.bf16 %v374_v46, %v372_v44  ;;  %v938_v46 = vld [vmem:[%s1960_s6 + $0x8] sm:$0xff] }
  0x9b   : > { %v379_v47 = vpack.c.bf16 %v375_v45, %v373_v43  ;;  %v937_v45 = vld [vmem:[%s1960_s6] sm:$0xff] }
  0x9c   : > { %891 = vmatpush1.bf16.msra.mxu0 %v1541_v26  ;;  %v1453_v51 = vpack.c.bf16 %v938_v46, %v937_v45  ;;  %v947_v26 = vld [vmem:[%s1960_s6 + $0x50] sm:$0xff] }
  0x9d   : > { %1222 = vmatprep.mubr.msk.bf16.mxu0 %vm322_vm11, %v379_v47  ;;  %892 = vmatprep.subr.bf16.mxu0 %v1560_v1 }
  0x9f   : > { %506 = vmatmul.mubr.bf16.gmra.mrb[4].mxu0 %v378_v48 }
  0xa0   : > { %893 = vmatpush1.bf16.msra.mxu0 %v1542_v27  ;;  %v948_v27 = vld [vmem:[%s1960_s6 + $0x58] sm:$0xff] }
  0xa1   : > { %894 = vmatprep.subr.bf16.mxu0 %v1560_v1 }
  0xa4   : > { %895 = vmatpush1.bf16.msra.mxu0 %v1543_v28  ;;  %v1279_v28 = vld [vmem:[%s1960_s6 + $0xd0] sm:$0xff] }
  0xa5   : > { %896 = vmatprep.subr.bf16.mxu0 %v1560_v1 }
  0xa8   : > { %897 = vmatpush1.bf16.msra.mxu0 %v1544_v29  ;;  %v1468_v29 = vpack.c.bf16 %v948_v27, %v947_v26 }
  0xa9   : > { %898 = vmatprep.subr.bf16.mxu0 %v1560_v1 }
  0xac   : > { %899 = vmatpush1.bf16.msra.mxu0 %v1545_v30  ;;  %v1280_v30 = vld [vmem:[%s1960_s6 + $0xd8] sm:$0xff] }
  0xad   : > { %900 = vmatprep.subr.bf16.mxu0 %v1560_v1 }
  0xb0   : > { %901 = vmatpush1.bf16.msra.mxu0 %v1546_v31  ;;  %v1492_v31 = vpack.c.bf16 %v1280_v30, %v1279_v28 }
  0xb1   : > { %902 = vmatprep.subr.bf16.mxu0 %v1560_v1 }
  0xb4   : > { %903 = vmatpush1.bf16.msra.mxu0 %v1547_v32  ;;  %v949_v32 = vld [vmem:[%s1960_s6 + $0x60] sm:$0xff] }
  0xb5   : > { %904 = vmatprep.subr.bf16.mxu0 %v1560_v1 }
  0xb8   : > { %905 = vmatpush1.bf16.msra.mxu0 %v1548_v33  ;;  %v950_v33 = vld [vmem:[%s1960_s6 + $0x68] sm:$0xff] }
  0xb9   : > { %906 = vmatprep.subr.bf16.mxu0 %v1560_v1 }
  0xbc   : > { %907 = vmatpush1.bf16.msra.mxu0 %v1549_v38  ;;  %v952_v38 = vld [vmem:[%s1960_s6 + $0x78] sm:$0xff] }
  0xbd   : > { %908 = vmatprep.subr.bf16.mxu0 %v1560_v1 }
  0xc0   : > { %909 = vmatpush1.bf16.msra.mxu0 %v1550_v39 }
  0xc1   : > { %910 = vmatprep.subr.bf16.mxu0 %v1560_v1 }
  0xc4   : > { %911 = vmatpush1.bf16.msra.mxu0 %v1551_v40  ;;  %v1283_v40 = vld [vmem:[%s1960_s6 + $0xf0] sm:$0xff] }
  0xc5   : > { %1476 = vmatprep.subr.bf16.mxu0 %v1566_v50 }
 0x16a   : > { %v499_v56 = vpop.f32.mrb[0].mxu0 }
 0x16b   : > { %v500_v57 = vadd.f32 %v1211_v55, %v499_v56  ;;  %v501_v58 = vpop.f32.mrb[1].mxu0  ;;  %v1456_v56 = vpack.c.bf16 %v940_v53, %v939_v52 }
 0x16c   : > { %v502_v59 = vpop.f32.mrb[2].mxu0  ;;  %v942_v58 = vld [vmem:[%s1960_s6 + $0x28] sm:$0xff] }
 0x16d   : > { %v514_v60 = vmax.f32 %v500_v57, 0.0  ;;  %v503_v61 = vadd.f32 %v1211_v55, %v502_v59  ;;  %v504_v62 = vpop.f32.mrb[3].mxu0  ;;  %v941_v57 = vld [vmem:[%s1960_s6 + $0x20] sm:$0xff] }
 0x16e   : > { %v1459_v59 = vpack.c.bf16 %v942_v58, %v941_v57 }
 0x16f   : > { %518 = vst [vmem:[#allocation3] sm:$0xff] %v514_v60  ;;  %v515_v63 = vmax.f32 %v503_v61, 0.0  ;;  %v943_v60 = vld [vmem:[%s1960_s6 + $0x30] sm:$0xff]  ;;  %v944_v61 = vld [vmem:[%s1960_s6 + $0x38] sm:$0xff] }
 0x170   : > { %v1462_v62 = vpack.c.bf16 %v944_v61, %v943_v60 }
 0x171   : > { %519 = vst [vmem:[#allocation3 + $0x8] sm:$0xff] %v515_v63 }
 0x172   : > { %v507_v0 = vpop.f32.mrb[4].mxu0 }
 0x173   : > { %v508_v2 = vadd.f32 %v1211_v55, %v507_v0  ;;  %v509_v4 = vpop.f32.mrb[5].mxu0 }
 0x174   : > { %v510_v5 = vpop.f32.mrb[6].mxu0 }
 0x175   : > { %v516_v6 = vmax.f32 %v508_v2, 0.0  ;;  %v511_v7 = vadd.f32 %v1211_v55, %v510_v5  ;;  %v512_v8 = vpop.f32.mrb[7].mxu0 }
 0x177   : > { %520 = vst [vmem:[#allocation3 + $0x10] sm:$0xff] %v516_v6  ;;  %v517_v9 = vmax.f32 %v511_v7, 0.0  ;;  %v1269_v6 = vld [vmem:[%s1960_s6 + $0x80] sm:$0xff]  ;;  %v1270_v7 = vld [vmem:[%s1960_s6 + $0x88] sm:$0xff] }
 0x178   : > { %v522_v10 = vld [vmem:[#allocation3] ss:$2 sm:$0xff]  ;;  %v526_v11 = vld [vmem:[#allocation3 + $0x1] ss:$2 sm:$0xff] }
 0x179   : > { %521 = vst [vmem:[#allocation3 + $0x18] sm:$0xff] %v517_v9  ;;  %v529_v14 = vmax.f32 %v522_v10, %v526_v11  ;;  %v1477_v10 = vpack.c.bf16 %v1270_v7, %v1269_v6 }
 0x180   : > { %v524_v12 = vld [vmem:[#allocation3 + $0x10] ss:$2 sm:$0xff]  ;;  %v528_v13 = vld [vmem:[#allocation3 + $0x11] ss:$2 sm:$0xff] }
 0x181   : > { %v530_v15 = vmax.f32 %v524_v12, %v528_v13  ;;  %v1271_v12 = vld [vmem:[%s1960_s6 + $0x90] sm:$0xff]  ;;  %v1272_v13 = vld [vmem:[%s1960_s6 + $0x98] sm:$0xff] }
 0x183   : > { %v531_v17 = vpack.c.bf16 %v530_v15, %v529_v14  ;;  %v1480_v14 = vpack.c.bf16 %v1272_v13, %v1271_v12  ;;  %v1273_v15 = vld [vmem:[%s1960_s6 + $0xa0] sm:$0xff] }
 0x185   : > { %1359 = vmatmul.mubr.bf16.vlgmr.msra.gmra.mrb[0].mxu1 %v531_v17 }
 0x186   : > { %1363 = vmatpush3.bf16.msra.mxu1 %v1532_v16  ;;  %1378 = vmatprep.mubr.msk.bf16.mxu1 %vm1564_vm12, %v1561_v3  ;;  %v1274_v16 = vld [vmem:[%s1960_s6 + $0xa8] sm:$0xff] }
 0x187   : > { %1364 = vmatprep.subr.bf16.mxu1 %v1561_v3 }
 0x18a   : > { %1365 = vmatpush3.bf16.msra.mxu1 %v1533_v18  ;;  %v1275_v18 = vld [vmem:[%s1960_s6 + $0xb0] sm:$0xff] }
 0x18b   : > { %1366 = vmatprep.subr.bf16.mxu1 %v1561_v3 }
 0x18e   : > { %1367 = vmatpush3.bf16.msra.mxu1 %v1534_v19 }
 0x18f   : > { %1368 = vmatprep.subr.bf16.mxu1 %v1561_v3 }
 0x192   : > { %1369 = vmatpush3.bf16.msra.mxu1 %v1535_v20  ;;  %v945_v20 = vld [vmem:[%s1960_s6 + $0x40] sm:$0xff] }
 0x193   : > { %1370 = vmatprep.subr.bf16.mxu1 %v1561_v3 }
 0x196   : > { %1371 = vmatpush3.bf16.msra.mxu1 %v1536_v21  ;;  %v946_v21 = vld [vmem:[%s1960_s6 + $0x48] sm:$0xff] }
 0x197   : > { %1372 = vmatprep.subr.bf16.mxu1 %v1561_v3 }
 0x19a   : > { %1373 = vmatpush3.bf16.msra.mxu1 %v1537_v22  ;;  %v1277_v22 = vld [vmem:[%s1960_s6 + $0xc0] sm:$0xff] }
 0x19b   : > { %1374 = vmatprep.subr.bf16.mxu1 %v1561_v3 }
 0x19e   : > { %1375 = vmatpush3.bf16.msra.mxu1 %v1538_v23  ;;  %v1465_v23 = vpack.c.bf16 %v946_v21, %v945_v20 }
 0x19f   : > { %1376 = vmatprep.subr.bf16.mxu1 %v1561_v3 }
 0x1a2   : > { %1377 = vmatpush3.bf16.msra.mxu1 %v1539_v24  ;;  %v1278_v24 = vld [vmem:[%s1960_s6 + $0xc8] sm:$0xff] }
 0x1a3   : > { %1452 = vmatprep.subr.bf16.mxu1 %v1566_v50  ;;  %v1489_v25 = vpack.c.bf16 %v1278_v24, %v1277_v22 }
 0x1a5   : > { %1379 = vmatmul.mubr.bf16.vlgmr.msra.gmra.mrb[4].mxu1 %v531_v17  ;;  %v1483_v17 = vpack.c.bf16 %v1274_v16, %v1273_v15 }
 0x1a6   : > { %1414 = vmatprep.mubr.msk.f32.mxu1 %vm1564_vm12, %v1561_v3  ;;  %1454 = vmatpush3.bf16.msra.mxu1 %v1453_v51 }
 0x1a7   : > { %1455 = vmatprep.subr.bf16.mxu1 %v1566_v50 }
 0x1aa   : > { %1457 = vmatpush3.bf16.msra.mxu1 %v1456_v56 }
 0x1ab   : > { %1458 = vmatprep.subr.bf16.mxu1 %v1566_v50 }
 0x1ae   : > { %1460 = vmatpush3.bf16.msra.mxu1 %v1459_v59 }
 0x1af   : > { %1461 = vmatprep.subr.bf16.mxu1 %v1566_v50 }
 0x1b2   : > { %1463 = vmatpush3.bf16.msra.mxu1 %v1462_v62 }
 0x1b3   : > { %1464 = vmatprep.subr.bf16.mxu1 %v1566_v50 }
 0x1b6   : > { %1466 = vmatpush3.bf16.msra.mxu1 %v1465_v23 }
 0x1b7   : > { %1467 = vmatprep.subr.bf16.mxu1 %v1566_v50 }
 0x1ba   : > { %1469 = vmatpush3.bf16.msra.mxu1 %v1468_v29 }
 0x1bb   : > { %1470 = vmatprep.subr.bf16.mxu1 %v1566_v50 }
 0x258   : > { %v630_v34 = vpop.f32.mrb[0].mxu1 }
 0x259   : > { %v1360_v35 = vpop.f32.mrb[1].mxu1 }
 0x25a   : > { %v633_v36 = vpop.f32.mrb[2].mxu1  ;;  %v1471_v35 = vpack.c.bf16 %v950_v33, %v949_v32 }
 0x25b   : > { %v1361_v37 = vpop.f32.mrb[3].mxu1 }
 0x25c   : > { %v951_v37 = vld [vmem:[%s1960_s6 + $0x70] sm:$0xff]  ;;  %1472 = vmatpush3.bf16.msra.mxu1 %v1471_v35 }
 0x25d   : > { %1473 = vmatprep.subr.bf16.mxu1 %v1566_v50 }
 0x278   : > { %v736_v41 = vpop.f32.mrb[4].mxu1 }
 0x279   : > { %v743_v42 = vmax.f32 %v630_v34, %v736_v41  ;;  %v1380_v43 = vpop.f32.mrb[5].mxu1  ;;  %v1281_v34 = vld [vmem:[%s1960_s6 + $0xe0] sm:$0xff]  ;;  %v1284_v41 = vld [vmem:[%s1960_s6 + $0xf8] sm:$0xff] }
 0x27a   : > { %v739_v44 = vpop.f32.mrb[6].mxu1  ;;  %v1498_v43 = vpack.c.bf16 %v1284_v41, %v1283_v40 }
 0x27b   : > { %v748_v47 = vrot.slane %v743_v42, 7  ;;  %v757_v48 = vrot.slane %v743_v42, 1  ;;  %v744_v49 = vmax.f32 %v633_v36, %v739_v44  ;;  %752 = vrot.lane.b32.xlu0 %v743_v42, %s1565_s29  ;;  %v1381_v1 = vpop.f32.mrb[7].mxu1  ;;  %v1282_v36 = vld [vmem:[%s1960_s6 + $0xe8] sm:$0xff]  ;;  %v1474_v42 = vpack.c.bf16 %v952_v38, %v951_v37  ;;  %v1255_v44 = vld [vmem:[%s1958_s4] ss:$0 sm:$0xff] }
 0x27c   : > { %v1495_v39 = vpack.c.bf16 %v1282_v36, %v1281_v34 }
 0x27d   : > { %751 = vst.msk [vmem:[#allocation4] sm:$0xfe] %vm750_vm14, %v748_v47  ;;  %v764_v54 = vrot.slane %v744_v49, 7  ;;  %v771_v55 = vrot.slane %v744_v49, 1  ;;  %767 = vrot.lane.b32.xlu1 %v744_v49, %s1565_s29  ;;  %1475 = vmatpush3.bf16.msra.mxu1 %v1474_v42 }
 0x27e   : > { %760 = vst.msk [vmem:[#allocation4 + $0x8] sm:$0x7f] %vm759_vm15, %v757_v48 }
 0x27f   : > { %766 = vst.msk [vmem:[#allocation4 + $0x10] sm:$0xfe] %vm750_vm14, %v764_v54 }
 0x280   : > { %773 = vst.msk [vmem:[#allocation4 + $0x18] sm:$0x7f] %vm759_vm15, %v771_v55 }
 0x285   : > { %v776_v63 = vld [vmem:[#allocation4 + $0x8] sm:$0xff] }
 0x287   : > { %v778_v0 = vld [vmem:[#allocation4 + $0x18] sm:$0xff] }
 0x288   : > { %v780_v2 = vpack.c.bf16 %v778_v0, %v776_v63 }
 0x28a   : > { %1268 = vmatprep.mubr.msk.bf16.mxu0 %vm884_vm0, %v780_v2 }
 0x2ed   : > { %v753_v4 = vpop.permute.xlu0 %752 }
 0x2ee   : > { %756 = vst.msk [vmem:[#allocation4] sm:$0xff] %vm755_vm1, %v753_v4 }
 0x2ef   : > { %v768_v5 = vpop.permute.xlu1 %767 }
 0x2f0   : > { %770 = vst.msk [vmem:[#allocation4 + $0x10] sm:$0xff] %vm755_vm1, %v768_v5 }
 0x2f5   : > { %v775_v8 = vld [vmem:[#allocation4] sm:$0xff] }
 0x2f7   : > { %v777_v9 = vld [vmem:[#allocation4 + $0x10] sm:$0xff] }
 0x2f8   : > { %v779_v11 = vpack.c.bf16 %v777_v9, %v775_v8 }
 0x2fa   : > { %921 = vmatmul.mubr.bf16.vlgmr.msra.gmra.mrb[8].mxu0 %v779_v11 }
 0x2fb   : > { %1478 = vmatpush3.bf16.msra.mxu0 %v1477_v10  ;;  %1449 = vmatprep.mubr.msk.f32.mxu0 %vm1564_vm12, %v1561_v3  ;;  %v1276_v3 = vld [vmem:[%s1960_s6 + $0xb8] sm:$0xff] }
 0x2fc   : > { %1479 = vmatprep.subr.bf16.mxu0 %v1566_v50  ;;  %v1486_v19 = vpack.c.bf16 %v1276_v3, %v1275_v18 }
 0x2ff   : > { %1481 = vmatpush3.bf16.msra.mxu0 %v1480_v14 }
 0x300   : > { %1482 = vmatprep.subr.bf16.mxu0 %v1566_v50 }
 0x303   : > { %1484 = vmatpush3.bf16.msra.mxu0 %v1483_v17 }
 0x304   : > { %1485 = vmatprep.subr.bf16.mxu0 %v1566_v50 }
 0x307   : > { %1487 = vmatpush3.bf16.msra.mxu0 %v1486_v19 }
 0x308   : > { %1488 = vmatprep.subr.bf16.mxu0 %v1566_v50 }
 0x30b   : > { %1490 = vmatpush3.bf16.msra.mxu0 %v1489_v25 }
 0x30c   : > { %1491 = vmatprep.subr.bf16.mxu0 %v1566_v50 }
 0x30f   : > { %1493 = vmatpush3.bf16.msra.mxu0 %v1492_v31 }
 0x310   : > { %1494 = vmatprep.subr.bf16.mxu0 %v1566_v50 }
 0x313   : > { %1496 = vmatpush3.bf16.msra.mxu0 %v1495_v39 }
 0x314   : > { %1497 = vmatprep.subr.bf16.mxu0 %v1566_v50 }
 0x317   : > { %1499 = vmatpush3.bf16.msra.mxu0 %v1498_v43 }
 0x3cd   : > { %v922_v45 = vpop.f32.mrb[8].mxu0 }
 0x3ce   : > { %v923_v46 = vadd.f32 %v1255_v44, %v922_v45  ;;  %v924_v47 = vpop.f32.mrb[9].mxu0 }
 0x3cf   : > { %v925_v48 = vpop.f32.mrb[10].mxu0 }
 0x3d0   : > { %v929_v49 = vmax.f32 %v923_v46, 0.0  ;;  %v926_v1 = vadd.f32 %v1255_v44, %v925_v48  ;;  %v927_v51 = vpop.f32.mrb[11].mxu0 }
 0x3d2   : > { %931 = vst [vmem:[#allocation5] sm:$0xff] %v929_v49  ;;  %v930_v52 = vmax.f32 %v926_v1, 0.0 }
 0x3d4   : > { %932 = vst [vmem:[#allocation5 + $0x8] sm:$0xff] %v930_v52 }
 0x3db   : > { %v933_v53 = vld [vmem:[#allocation5] ss:$2 sm:$0xff]  ;;  %v935_v50 = vld [vmem:[#allocation5 + $0x1] ss:$2 sm:$0xff] }
 0x3dc   : > { %v936_v54 = vmax.f32 %v933_v53, %v935_v50 }
 0x3de   : > { %1415 = vmatmul.mubr.f32.vlgmr.msra.gmra.mrb[8].mxu1 %v936_v54  ;;  %1450 = vmatmul.mubr.f32.vlgmr.msra.gmra.mrb[12].mxu0 %v936_v54 }
 0x4b1   : > { %v1019_v55 = vpop.f32.mrb[8].mxu1  ;;  %v1106_v56 = vpop.f32.mrb[12].mxu0 }
 0x4b2   : > { %v1110_v57 = vmax.f32 %v1019_v55, %v1106_v56  ;;  %v1416_v58 = vpop.f32.mrb[9].mxu1  ;;  %v1451_v59 = vpop.f32.mrb[13].mxu0 }
 0x4b4   : > { %v1118_v60 = vrot.slane %v1110_v57, 3  ;;  %v1112_v61 = vrot.slane %v1110_v57, 1  ;;  %v1116_v62 = vrot.slane %v1110_v57, 2 }
 0x4b6   : > { %1119 = vrot.lane.b32.xlu1 %v1118_v60, %s1565_s29  ;;  %1113 = vrot.lane.b32.xlu0 %v1112_v61, %s1565_s29 }
 0x528   : > { %v1120_v63 = vpop.permute.xlu1 %1119  ;;  %v1114_v0 = vpop.permute.xlu0 %1113 }
 0x529   : > { %v1123_v2 = vsel %vm884_vm0, %v1116_v62, %v1120_v63  ;;  %v1122_v4 = vsel %vm884_vm0, %v1110_v57, %v1114_v0 }
 0x52a   : > { %v1127_v5 = vrot.slane %v1123_v2, 3  ;;  %v1126_v6 = vrot.slane %v1122_v4, 3 }
 0x52c   : > { %v1131_v7 = vsel %vm291_vm3, %v1123_v2, %v1127_v5  ;;  %v1130_v8 = vsel %vm291_vm3, %v1122_v4, %v1126_v6 }
 0x52d   : > { %v1134_v9 = vcombine.low %v1130_v8, %v1131_v7 }
 0x52f   : > { %1285 = vst.sshfl [vmem:[%s283_s12] sm:$0x33 pattern:$0x76325410] %v1134_v9 }
 0x530 PF: > { %s17_s24 = sadd.s32 1, %s1558_s24  }
 0x531   : > { %p14_p5 = scmp.ge.s32.totalorder %s17_s24, 4  }
 0x533   :  { %16 = sbr.rel (!%p14_p5) target bundleno = 1 (0x1), region = 85 }

</bundles_post_ra>
